<compile_context>
chip_gen: v5e
topology: v5e:2x2
jax: 0.10.0
libtpu: 0.0.40
codegen_flags: <defaults>
</compile_context>

<pallas_src>
import functools

import numpy as np
import jax
import jax.numpy as jnp
from jax import lax
from jax.experimental import pallas as pl
from jax.experimental.pallas import tpu as pltpu


# ---------------------------------------------------------------------------
# Static circular lane shift: y[:, j] = x[:, (j + off) % L], first `width` lanes
# ---------------------------------------------------------------------------
def _shift_window(x, off, width):
    L = x.shape[-1]
    if 0 <= off and off + width <= L:
        return x[:, off:off + width]
    s = off % L
    y = jnp.concatenate([x[:, s:], x[:, :s]], axis=-1)
    return y[:, :width]


# ---------------------------------------------------------------------------
# Fused SSEBlock kernel: one (batch image, row tile) per grid step
# ---------------------------------------------------------------------------
def _sse_kernel(x_mid_ref, x_up_ref, x_dn_ref,
                w1t_ref, w2t_ref, w3t_ref, wd_ref,
                sb_s_ref, sb_b_ref, o_ref, *, W):
    Cin, THW = x_mid_ref.shape          # (inp, TH*W)
    oup = w1t_ref.shape[0]
    OC = w2t_ref.shape[0]               # 4 * oup
    TH = THW // W
    LE = THW + 2 * W                    # ext rows -1 .. TH, flattened on lanes

    i = pl.program_id(1)
    nh = pl.num_programs(1)

    # ---- pwc1: 1x1 conv + BN + ReLU (channels-first, spatial on lanes) ----
    up_row = x_up_ref[...][:, 128 - W:]           # row just above the tile
    dn_row = x_dn_ref[...][:, :W]                 # row just below the tile
    x_ext = jnp.concatenate([up_row, x_mid_ref[...], dn_row], axis=-1)  # (Cin, LE)

    sb_s = sb_s_ref[...]                          # (oup, 4): s1, b1, sd, bd
    h = jnp.dot(w1t_ref[...], x_ext, preferred_element_type=jnp.float32)
    h = jnp.maximum(h * sb_s[:, 0:1] + sb_s[:, 1:2], 0.0)              # (oup, LE)

    # Zero halo rows that fall outside the image (zero padding of h for the dw conv).
    lane = lax.broadcasted_iota(jnp.int32, (1, LE), 1)
    pad = jnp.logical_or(jnp.logical_and(i == 0, lane < W),
                         jnp.logical_and(i == nh - 1, lane >= (TH + 1) * W))
    h = jnp.where(pad, 0.0, h)

    # ---- depthwise 3x3 (pad=1) + BN + ReLU: 9 lane-shifted FMAs, all in vregs ----
    col = lax.broadcasted_iota(jnp.int32, (1, THW), 1) % W
    not_first = col > 0
    not_last = col < (W - 1)
    wd = wd_ref[...]                              # (oup, 9) f32

    h_mid = _shift_window(h, W, THW)              # pwc1 output for the tile rows

    acc = jnp.zeros((oup, THW), jnp.float32)
    for ky in range(3):                           # static unroll, 9 taps
        for kx in range(3):
            off = ky * W + (kx - 1)
            src = h_mid if (ky == 1 and kx == 1) else _shift_window(h, off, THW)
            if kx == 0:
                src = jnp.where(not_first, src, 0.0)
            elif kx == 2:
                src = jnp.where(not_last, src, 0.0)
            t = ky * 3 + kx
            acc = acc + src * wd[:, t:t + 1]
    d = jnp.maximum(acc * sb_s[:, 2:3] + sb_s[:, 3:4], 0.0)            # (oup, THW)

    # ---- pwc2(h) and dwc.pwc(d), stored straight into the NCHW concat output ----
    sb_b = sb_b_ref[...]                          # (OC, 4): s2, b2, s3, b3
    out1 = jnp.dot(w2t_ref[...], h_mid, preferred_element_type=jnp.float32)
    out1 = jnp.maximum(out1 * sb_b[:, 0:1] + sb_b[:, 1:2], 0.0)        # (OC, THW)
    out2 = jnp.dot(w3t_ref[...], d, preferred_element_type=jnp.float32)
    out2 = jnp.maximum(out2 * sb_b[:, 2:3] + sb_b[:, 3:4], 0.0)        # (OC, THW)

    o_ref[0:OC, :] = out1                         # sublane-aligned, lane-full stores
    o_ref[OC:2 * OC, :] = out2


# ---------------------------------------------------------------------------
# Row-tile chooser: TH | H, TH*W multiple of 128, output slab VMEM-bounded
# ---------------------------------------------------------------------------
def _choose_row_tile(H, W, OC):
    # Double-buffered f32 output slab (2*OC x TH*W) kept under ~4 MiB (v7x-safe).
    max_lanes = max(128, (4 * 1024 * 1024) // (2 * OC * 4 * 2))
    best = None
    for th in range(1, H + 1):
        if H % th or (th * W) % 128:
            continue
        if th * W <= max_lanes:
            best = th
    return best if best is not None else H


# ---------------------------------------------------------------------------
# Wrapper: no transposes, no dtype passes — only free contiguous reshapes
# ---------------------------------------------------------------------------
def sse_block_pallas(x_nchw, p):
    """SSEBlock forward. x_nchw: (N, Cin, H, W) f32 -> (N, 8*oup, H, W) f32."""
    N, Cin, H, W = x_nchw.shape
    oup = p["w1t"].shape[0]
    OC = 4 * oup
    HW = H * W
    assert W <= 128 and HW % 128 == 0, "unsupported spatial shape for this kernel"

    TH = _choose_row_tile(H, W, OC)
    nH = H // TH
    THW = TH * W
    BT = THW // 128                      # 128-lane blocks per row tile
    NB = HW // 128                       # 128-lane blocks per image

    xf = x_nchw.reshape(N, Cin, HW)      # free contiguous reshape (stays NCHW)

    # Pack the eight per-channel BN scale/bias vectors into two small arrays.
    sb_s = jnp.stack([p["s1"], p["b1"], p["sd"], p["bd"]], axis=1)   # (oup, 4)
    sb_b = jnp.stack([p["s2"], p["b2"], p["s3"], p["b3"]], axis=1)   # (OC, 4)

    kernel = functools.partial(_sse_kernel, W=W)

    out = pl.pallas_call(
        kernel,
        out_shape=jax.ShapeDtypeStruct((N, 2 * OC, HW), jnp.float32),
        grid=(N, nH),
        in_specs=[
            # row tile of x (flattened spatial on lanes)
            pl.BlockSpec((None, Cin, THW), lambda n, i: (n, 0, i)),
            # 128-lane block whose last W lanes are the row above the tile
            pl.BlockSpec((None, Cin, 128),
                         lambda n, i: (n, 0, jnp.maximum(i * BT - 1, 0))),
            # 128-lane block whose first W lanes are the row below the tile
            pl.BlockSpec((None, Cin, 128),
                         lambda n, i: (n, 0, jnp.minimum((i + 1) * BT, NB - 1))),
            pl.BlockSpec((oup, Cin), lambda n, i: (0, 0)),   # w1^T
            pl.BlockSpec((OC, oup), lambda n, i: (0, 0)),    # w2^T
            pl.BlockSpec((OC, oup), lambda n, i: (0, 0)),    # w3^T
            pl.BlockSpec((oup, 9), lambda n, i: (0, 0)),     # depthwise taps
            pl.BlockSpec((oup, 4), lambda n, i: (0, 0)),     # s1,b1,sd,bd
            pl.BlockSpec((OC, 4), lambda n, i: (0, 0)),      # s2,b2,s3,b3
        ],
        out_specs=pl.BlockSpec((None, 2 * OC, THW), lambda n, i: (n, 0, i)),
        compiler_params=pltpu.CompilerParams(
            dimension_semantics=("parallel", "parallel")),
    )(xf, xf, xf, p["w1t"], p["w2t"], p["w3t"], p["wd9"], sb_s, sb_b)

    return out.reshape(N, 2 * OC, H, W)   # free contiguous reshape (NCHW output)


# ---------------------------------------------------------------------------
# Parameter construction (deterministic synthetic weights; BN folded, f32)
# ---------------------------------------------------------------------------
def _folded_bn(k, c):
    k1, k2, k3, k4 = jax.random.split(k, 4)
    gamma = 1.0 + 0.1 * jax.random.normal(k1, (c,), jnp.float32)
    beta = 0.1 * jax.random.normal(k2, (c,), jnp.float32)
    mean = 0.05 * jax.random.normal(k3, (c,), jnp.float32)
    var = 0.5 + jax.random.uniform(k4, (c,), jnp.float32)
    scale = gamma / jnp.sqrt(var + 1e-5)
    return scale, beta - mean * scale


def make_params(key, inp, oup):
    oc = 4 * oup
    ks = jax.random.split(key, 8)
    p = {}
    p["w1t"] = jax.random.normal(ks[0], (oup, inp), jnp.float32) / np.sqrt(inp)
    p["s1"], p["b1"] = _folded_bn(ks[1], oup)
    p["w2t"] = jax.random.normal(ks[2], (oc, oup), jnp.float32) / np.sqrt(oup)
    p["s2"], p["b2"] = _folded_bn(ks[3], oc)
    p["wd9"] = jax.random.normal(ks[4], (oup, 9), jnp.float32) / 3.0   # (c, ky*3+kx)
    p["sd"], p["bd"] = _folded_bn(ks[5], oup)
    p["w3t"] = jax.random.normal(ks[6], (oc, oup), jnp.float32) / np.sqrt(oup)
    p["s3"], p["b3"] = _folded_bn(ks[7], oc)
    return p


# ---------------------------------------------------------------------------
# Pure-JAX f32 reference (NCHW, highest precision)
# ---------------------------------------------------------------------------
def sse_block_reference(x, p):
    oup = p["w1t"].shape[0]

    def bnrelu(y, s, b):
        return jnp.maximum(y * s[None, :, None, None] + b[None, :, None, None], 0.0)

    def pw(y, w):
        return jnp.einsum("nchw,oc->nohw", y, w, precision=lax.Precision.HIGHEST)

    h = bnrelu(pw(x, p["w1t"]), p["s1"], p["b1"])
    out1 = bnrelu(pw(h, p["w2t"]), p["s2"], p["b2"])
    wd = p["wd9"].reshape(oup, 1, 3, 3)
    d = lax.conv_general_dilated(
        h, wd, window_strides=(1, 1), padding="SAME",
        dimension_numbers=("NCHW", "OIHW", "NCHW"),
        feature_group_count=oup, precision=lax.Precision.HIGHEST)
    d = bnrelu(d, p["sd"], p["bd"])
    out2 = bnrelu(pw(d, p["w3t"]), p["s3"], p["b3"])
    return jnp.concatenate([out1, out2], axis=1)


if __name__ == "__main__":
    inp, oup = 4, 8
    N, H, W = 2, 16, 16

    key = jax.random.PRNGKey(0)
    kx, kp = jax.random.split(key)
    x = jax.random.normal(kx, (N, inp, H, W), jnp.float32)   # NCHW like PyTorch
    params = make_params(kp, inp, oup)

    out = jax.block_until_ready(sse_block_pallas(x, params))
    assert out.shape == (N, 8 * oup, H, W), out.shape        # oup*4 + oup*4 channels

    ref = jax.block_until_ready(sse_block_reference(x, params))
    assert np.allclose(np.asarray(out), np.asarray(ref), atol=2e-2, rtol=2e-2)

    print("KERNEL_OK")
</pallas_src>

<mosaic_0001>
module attributes {stable_mosaic.version = 11 : i64} {
  func.func @_sse_kernel(%arg0: i32, %arg1: i32, %arg2: memref<1x4x256xf32, #tpu.memory_space<vmem>>, %arg3: memref<1x4x128xf32, #tpu.memory_space<vmem>>, %arg4: memref<1x4x128xf32, #tpu.memory_space<vmem>>, %arg5: memref<8x4xf32, #tpu.memory_space<vmem>>, %arg6: memref<32x8xf32, #tpu.memory_space<vmem>>, %arg7: memref<32x8xf32, #tpu.memory_space<vmem>>, %arg8: memref<8x9xf32, #tpu.memory_space<vmem>>, %arg9: memref<8x4xf32, #tpu.memory_space<vmem>>, %arg10: memref<32x4xf32, #tpu.memory_space<vmem>>, %arg11: memref<1x64x256xf32, #tpu.memory_space<vmem>>) attributes {dimension_semantics = [#tpu.dimension_semantics<parallel>, #tpu.dimension_semantics<parallel>], iteration_bounds = array<i64: 2, 1>, scalar_prefetch = 0 : i64, scratch_operands = 0 : i64, tpu.core_type = #tpu.core_type<tc>, window_params = [{transform_indices = @transform_0, window_bounds = array<i64: 1, 4, 256>}, {transform_indices = @transform_1, window_bounds = array<i64: 1, 4, 128>}, {transform_indices = @transform_2, window_bounds = array<i64: 1, 4, 128>}, {pipeline_mode = #tpu.pipeline_mode<synchronous>, transform_indices = @transform_3, window_bounds = array<i64: 8, 4>}, {pipeline_mode = #tpu.pipeline_mode<synchronous>, transform_indices = @transform_4, window_bounds = array<i64: 32, 8>}, {pipeline_mode = #tpu.pipeline_mode<synchronous>, transform_indices = @transform_5, window_bounds = array<i64: 32, 8>}, {pipeline_mode = #tpu.pipeline_mode<synchronous>, transform_indices = @transform_6, window_bounds = array<i64: 8, 9>}, {pipeline_mode = #tpu.pipeline_mode<synchronous>, transform_indices = @transform_7, window_bounds = array<i64: 8, 4>}, {pipeline_mode = #tpu.pipeline_mode<synchronous>, transform_indices = @transform_8, window_bounds = array<i64: 32, 4>}, {transform_indices = @transform_9, window_bounds = array<i64: 1, 64, 256>}]} {
    %c0 = arith.constant 0 : index
    %c0_0 = arith.constant 0 : index
    %c0_1 = arith.constant 0 : index
    %0 = vector.load %arg3[%c0, %c0_0, %c0_1] : memref<1x4x128xf32, #tpu.memory_space<vmem>>, vector<1x4x128xf32>
    %1 = vector.shape_cast %0 : vector<1x4x128xf32> to vector<4x128xf32>
    %2 = vector.extract_strided_slice %1 {offsets = [0, 112], sizes = [4, 16], strides = [1, 1]} : vector<4x128xf32> to vector<4x16xf32>
    %c0_2 = arith.constant 0 : index
    %c0_3 = arith.constant 0 : index
    %c0_4 = arith.constant 0 : index
    %3 = vector.load %arg4[%c0_2, %c0_3, %c0_4] : memref<1x4x128xf32, #tpu.memory_space<vmem>>, vector<1x4x128xf32>
    %4 = vector.shape_cast %3 : vector<1x4x128xf32> to vector<4x128xf32>
    %5 = vector.extract_strided_slice %4 {offsets = [0, 0], sizes = [4, 16], strides = [1, 1]} : vector<4x128xf32> to vector<4x16xf32>
    %c0_5 = arith.constant 0 : index
    %c0_6 = arith.constant 0 : index
    %c0_7 = arith.constant 0 : index
    %6 = vector.load %arg2[%c0_5, %c0_6, %c0_7] : memref<1x4x256xf32, #tpu.memory_space<vmem>>, vector<1x4x256xf32>
    %7 = vector.shape_cast %6 : vector<1x4x256xf32> to vector<4x256xf32>
    %8 = tpu.concatenate %2, %7, %5 in 1 : vector<4x16xf32>, vector<4x256xf32>, vector<4x16xf32> -> vector<4x288xf32>
    %c0_8 = arith.constant 0 : index
    %c0_9 = arith.constant 0 : index
    %9 = vector.load %arg9[%c0_8, %c0_9] : memref<8x4xf32, #tpu.memory_space<vmem>>, vector<8x4xf32>
    %c0_10 = arith.constant 0 : index
    %c0_11 = arith.constant 0 : index
    %10 = vector.load %arg5[%c0_10, %c0_11] : memref<8x4xf32, #tpu.memory_space<vmem>>, vector<8x4xf32>
    %cst = arith.constant dense<0.000000e+00> : vector<8x288xf32>
    %11 = tpu.matmul %10, %8, %cst {dimension_numbers = #tpu.dot_dimension_numbers<[1], [0], [0], [1], [0, 0, 1, 1], [], []>} : vector<8x4xf32>, vector<4x288xf32>, vector<8x288xf32> -> vector<8x288xf32>
    %12 = vector.extract_strided_slice %9 {offsets = [0, 0], sizes = [8, 1], strides = [1, 1]} : vector<8x4xf32> to vector<8x1xf32>
    %13 = vector.broadcast %12 : vector<8x1xf32> to vector<8x288xf32>
    %14 = arith.mulf %11, %13 : vector<8x288xf32>
    %15 = vector.extract_strided_slice %9 {offsets = [0, 1], sizes = [8, 1], strides = [1, 1]} : vector<8x4xf32> to vector<8x1xf32>
    %16 = vector.broadcast %15 : vector<8x1xf32> to vector<8x288xf32>
    %17 = arith.addf %14, %16 : vector<8x288xf32>
    %cst_12 = arith.constant 0.000000e+00 : f32
    %18 = vector.broadcast %cst_12 : f32 to vector<8x288xf32>
    %19 = arith.maximumf %17, %18 : vector<8x288xf32>
    %20 = tpu.iota {dimensions = array<i32: 1>} : vector<1x288xi32>
    %c0_i32 = arith.constant 0 : i32
    %21 = arith.cmpi eq, %arg1, %c0_i32 : i32
    %c16_i32 = arith.constant 16 : i32
    %22 = vector.broadcast %c16_i32 : i32 to vector<1x288xi32>
    %23 = arith.cmpi slt, %20, %22 : vector<1x288xi32>
    %24 = vector.broadcast %21 : i1 to vector<1x288xi1>
    %25 = arith.andi %24, %23 : vector<1x288xi1>
    %c0_i32_13 = arith.constant 0 : i32
    %26 = arith.cmpi eq, %arg1, %c0_i32_13 : i32
    %c272_i32 = arith.constant 272 : i32
    %27 = vector.broadcast %c272_i32 : i32 to vector<1x288xi32>
    %28 = arith.cmpi sge, %20, %27 : vector<1x288xi32>
    %29 = vector.broadcast %26 : i1 to vector<1x288xi1>
    %30 = arith.andi %29, %28 : vector<1x288xi1>
    %31 = arith.ori %25, %30 : vector<1x288xi1>
    %cst_14 = arith.constant 0.000000e+00 : f32
    %32 = vector.shape_cast %31 : vector<1x288xi1> to vector<1x288xi1>
    %33 = vector.broadcast %32 : vector<1x288xi1> to vector<8x288xi1>
    %34 = vector.broadcast %cst_14 : f32 to vector<8x288xf32>
    %35 = arith.select %33, %34, %19 : vector<8x288xi1>, vector<8x288xf32>
    %36 = tpu.iota {dimensions = array<i32: 1>} : vector<1x256xi32>
    %c16_i32_15 = arith.constant 16 : i32
    %c0_i32_16 = arith.constant 0 : i32
    %37 = arith.cmpi eq, %c16_i32_15, %c0_i32_16 : i32
    %c1_i32 = arith.constant 1 : i32
    %38 = arith.select %37, %c1_i32, %c16_i32_15 : i32
    %39 = vector.broadcast %38 : i32 to vector<1x256xi32>
    %40 = arith.remsi %36, %39 : vector<1x256xi32>
    %c0_i32_17 = arith.constant 0 : i32
    %41 = vector.broadcast %c0_i32_17 : i32 to vector<1x256xi32>
    %42 = arith.cmpi ne, %40, %41 : vector<1x256xi32>
    %c0_i32_18 = arith.constant 0 : i32
    %43 = vector.broadcast %c0_i32_18 : i32 to vector<1x256xi32>
    %44 = arith.cmpi slt, %40, %43 : vector<1x256xi32>
    %c0_i32_19 = arith.constant 0 : i32
    %45 = arith.cmpi slt, %38, %c0_i32_19 : i32
    %46 = vector.broadcast %45 : i1 to vector<1x256xi1>
    %47 = vector.broadcast %46 : vector<1x256xi1> to vector<1x256xi1>
    %48 = arith.xori %44, %47 : vector<1x256xi1>
    %49 = arith.andi %48, %42 : vector<1x256xi1>
    %50 = vector.broadcast %38 : i32 to vector<1x256xi32>
    %51 = arith.addi %40, %50 : vector<1x256xi32>
    %52 = arith.select %49, %51, %40 : vector<1x256xi1>, vector<1x256xi32>
    %c0_i32_20 = arith.constant 0 : i32
    %53 = vector.broadcast %c0_i32_20 : i32 to vector<1x256xi32>
    %54 = arith.cmpi sgt, %52, %53 : vector<1x256xi32>
    %c15_i32 = arith.constant 15 : i32
    %55 = vector.broadcast %c15_i32 : i32 to vector<1x256xi32>
    %56 = arith.cmpi slt, %52, %55 : vector<1x256xi32>
    %c0_21 = arith.constant 0 : index
    %c0_22 = arith.constant 0 : index
    %57 = vector.load %arg8[%c0_21, %c0_22] : memref<8x9xf32, #tpu.memory_space<vmem>>, vector<8x9xf32>
    %58 = vector.extract_strided_slice %35 {offsets = [0, 16], sizes = [8, 256], strides = [1, 1]} : vector<8x288xf32> to vector<8x256xf32>
    %cst_23 = arith.constant 0.000000e+00 : f32
    %59 = vector.broadcast %cst_23 : f32 to vector<8x256xf32>
    %60 = vector.extract_strided_slice %35 {offsets = [0, 287], sizes = [8, 1], strides = [1, 1]} : vector<8x288xf32> to vector<8x1xf32>
    %61 = vector.extract_strided_slice %35 {offsets = [0, 0], sizes = [8, 287], strides = [1, 1]} : vector<8x288xf32> to vector<8x287xf32>
    %62 = tpu.concatenate %60, %61 in 1 : vector<8x1xf32>, vector<8x287xf32> -> vector<8x288xf32>
    %63 = vector.extract_strided_slice %62 {offsets = [0, 0], sizes = [8, 256], strides = [1, 1]} : vector<8x288xf32> to vector<8x256xf32>
    %cst_24 = arith.constant 0.000000e+00 : f32
    %64 = vector.shape_cast %54 : vector<1x256xi1> to vector<1x256xi1>
    %65 = vector.broadcast %64 : vector<1x256xi1> to vector<8x256xi1>
    %66 = vector.broadcast %cst_24 : f32 to vector<8x256xf32>
    %67 = arith.select %65, %63, %66 : vector<8x256xi1>, vector<8x256xf32>
    %68 = vector.extract_strided_slice %57 {offsets = [0, 0], sizes = [8, 1], strides = [1, 1]} : vector<8x9xf32> to vector<8x1xf32>
    %69 = vector.broadcast %68 : vector<8x1xf32> to vector<8x256xf32>
    %70 = arith.mulf %67, %69 : vector<8x256xf32>
    %71 = arith.addf %59, %70 : vector<8x256xf32>
    %72 = vector.extract_strided_slice %35 {offsets = [0, 0], sizes = [8, 256], strides = [1, 1]} : vector<8x288xf32> to vector<8x256xf32>
    %73 = vector.extract_strided_slice %57 {offsets = [0, 1], sizes = [8, 1], strides = [1, 1]} : vector<8x9xf32> to vector<8x1xf32>
    %74 = vector.broadcast %73 : vector<8x1xf32> to vector<8x256xf32>
    %75 = arith.mulf %72, %74 : vector<8x256xf32>
    %76 = arith.addf %71, %75 : vector<8x256xf32>
    %77 = vector.extract_strided_slice %35 {offsets = [0, 1], sizes = [8, 256], strides = [1, 1]} : vector<8x288xf32> to vector<8x256xf32>
    %cst_25 = arith.constant 0.000000e+00 : f32
    %78 = vector.shape_cast %56 : vector<1x256xi1> to vector<1x256xi1>
    %79 = vector.broadcast %78 : vector<1x256xi1> to vector<8x256xi1>
    %80 = vector.broadcast %cst_25 : f32 to vector<8x256xf32>
    %81 = arith.select %79, %77, %80 : vector<8x256xi1>, vector<8x256xf32>
    %82 = vector.extract_strided_slice %57 {offsets = [0, 2], sizes = [8, 1], strides = [1, 1]} : vector<8x9xf32> to vector<8x1xf32>
    %83 = vector.broadcast %82 : vector<8x1xf32> to vector<8x256xf32>
    %84 = arith.mulf %81, %83 : vector<8x256xf32>
    %85 = arith.addf %76, %84 : vector<8x256xf32>
    %86 = vector.extract_strided_slice %35 {offsets = [0, 15], sizes = [8, 256], strides = [1, 1]} : vector<8x288xf32> to vector<8x256xf32>
    %cst_26 = arith.constant 0.000000e+00 : f32
    %87 = vector.shape_cast %54 : vector<1x256xi1> to vector<1x256xi1>
    %88 = vector.broadcast %87 : vector<1x256xi1> to vector<8x256xi1>
    %89 = vector.broadcast %cst_26 : f32 to vector<8x256xf32>
    %90 = arith.select %88, %86, %89 : vector<8x256xi1>, vector<8x256xf32>
    %91 = vector.extract_strided_slice %57 {offsets = [0, 3], sizes = [8, 1], strides = [1, 1]} : vector<8x9xf32> to vector<8x1xf32>
    %92 = vector.broadcast %91 : vector<8x1xf32> to vector<8x256xf32>
    %93 = arith.mulf %90, %92 : vector<8x256xf32>
    %94 = arith.addf %85, %93 : vector<8x256xf32>
    %95 = vector.extract_strided_slice %57 {offsets = [0, 4], sizes = [8, 1], strides = [1, 1]} : vector<8x9xf32> to vector<8x1xf32>
    %96 = vector.broadcast %95 : vector<8x1xf32> to vector<8x256xf32>
    %97 = arith.mulf %58, %96 : vector<8x256xf32>
    %98 = arith.addf %94, %97 : vector<8x256xf32>
    %99 = vector.extract_strided_slice %35 {offsets = [0, 17], sizes = [8, 256], strides = [1, 1]} : vector<8x288xf32> to vector<8x256xf32>
    %cst_27 = arith.constant 0.000000e+00 : f32
    %100 = vector.shape_cast %56 : vector<1x256xi1> to vector<1x256xi1>
    %101 = vector.broadcast %100 : vector<1x256xi1> to vector<8x256xi1>
    %102 = vector.broadcast %cst_27 : f32 to vector<8x256xf32>
    %103 = arith.select %101, %99, %102 : vector<8x256xi1>, vector<8x256xf32>
    %104 = vector.extract_strided_slice %57 {offsets = [0, 5], sizes = [8, 1], strides = [1, 1]} : vector<8x9xf32> to vector<8x1xf32>
    %105 = vector.broadcast %104 : vector<8x1xf32> to vector<8x256xf32>
    %106 = arith.mulf %103, %105 : vector<8x256xf32>
    %107 = arith.addf %98, %106 : vector<8x256xf32>
    %108 = vector.extract_strided_slice %35 {offsets = [0, 31], sizes = [8, 256], strides = [1, 1]} : vector<8x288xf32> to vector<8x256xf32>
    %cst_28 = arith.constant 0.000000e+00 : f32
    %109 = vector.shape_cast %54 : vector<1x256xi1> to vector<1x256xi1>
    %110 = vector.broadcast %109 : vector<1x256xi1> to vector<8x256xi1>
    %111 = vector.broadcast %cst_28 : f32 to vector<8x256xf32>
    %112 = arith.select %110, %108, %111 : vector<8x256xi1>, vector<8x256xf32>
    %113 = vector.extract_strided_slice %57 {offsets = [0, 6], sizes = [8, 1], strides = [1, 1]} : vector<8x9xf32> to vector<8x1xf32>
    %114 = vector.broadcast %113 : vector<8x1xf32> to vector<8x256xf32>
    %115 = arith.mulf %112, %114 : vector<8x256xf32>
    %116 = arith.addf %107, %115 : vector<8x256xf32>
    %117 = vector.extract_strided_slice %35 {offsets = [0, 32], sizes = [8, 256], strides = [1, 1]} : vector<8x288xf32> to vector<8x256xf32>
    %118 = vector.extract_strided_slice %57 {offsets = [0, 7], sizes = [8, 1], strides = [1, 1]} : vector<8x9xf32> to vector<8x1xf32>
    %119 = vector.broadcast %118 : vector<8x1xf32> to vector<8x256xf32>
    %120 = arith.mulf %117, %119 : vector<8x256xf32>
    %121 = arith.addf %116, %120 : vector<8x256xf32>
    %122 = vector.extract_strided_slice %35 {offsets = [0, 33], sizes = [8, 255], strides = [1, 1]} : vector<8x288xf32> to vector<8x255xf32>
    %123 = vector.extract_strided_slice %35 {offsets = [0, 0], sizes = [8, 33], strides = [1, 1]} : vector<8x288xf32> to vector<8x33xf32>
    %124 = tpu.concatenate %122, %123 in 1 : vector<8x255xf32>, vector<8x33xf32> -> vector<8x288xf32>
    %125 = vector.extract_strided_slice %124 {offsets = [0, 0], sizes = [8, 256], strides = [1, 1]} : vector<8x288xf32> to vector<8x256xf32>
    %cst_29 = arith.constant 0.000000e+00 : f32
    %126 = vector.shape_cast %56 : vector<1x256xi1> to vector<1x256xi1>
    %127 = vector.broadcast %126 : vector<1x256xi1> to vector<8x256xi1>
    %128 = vector.broadcast %cst_29 : f32 to vector<8x256xf32>
    %129 = arith.select %127, %125, %128 : vector<8x256xi1>, vector<8x256xf32>
    %130 = vector.extract_strided_slice %57 {offsets = [0, 8], sizes = [8, 1], strides = [1, 1]} : vector<8x9xf32> to vector<8x1xf32>
    %131 = vector.broadcast %130 : vector<8x1xf32> to vector<8x256xf32>
    %132 = arith.mulf %129, %131 : vector<8x256xf32>
    %133 = arith.addf %121, %132 : vector<8x256xf32>
    %134 = vector.extract_strided_slice %9 {offsets = [0, 2], sizes = [8, 1], strides = [1, 1]} : vector<8x4xf32> to vector<8x1xf32>
    %135 = vector.broadcast %134 : vector<8x1xf32> to vector<8x256xf32>
    %136 = arith.mulf %133, %135 : vector<8x256xf32>
    %137 = vector.extract_strided_slice %9 {offsets = [0, 3], sizes = [8, 1], strides = [1, 1]} : vector<8x4xf32> to vector<8x1xf32>
    %138 = vector.broadcast %137 : vector<8x1xf32> to vector<8x256xf32>
    %139 = arith.addf %136, %138 : vector<8x256xf32>
    %cst_30 = arith.constant 0.000000e+00 : f32
    %140 = vector.broadcast %cst_30 : f32 to vector<8x256xf32>
    %141 = arith.maximumf %139, %140 : vector<8x256xf32>
    %c0_31 = arith.constant 0 : index
    %c0_32 = arith.constant 0 : index
    %142 = vector.load %arg10[%c0_31, %c0_32] : memref<32x4xf32, #tpu.memory_space<vmem>>, vector<32x4xf32>
    %c0_33 = arith.constant 0 : index
    %c0_34 = arith.constant 0 : index
    %143 = vector.load %arg6[%c0_33, %c0_34] : memref<32x8xf32, #tpu.memory_space<vmem>>, vector<32x8xf32>
    %cst_35 = arith.constant dense<0.000000e+00> : vector<32x256xf32>
    %144 = tpu.matmul %143, %58, %cst_35 {dimension_numbers = #tpu.dot_dimension_numbers<[1], [0], [0], [1], [0, 0, 1, 1], [], []>} : vector<32x8xf32>, vector<8x256xf32>, vector<32x256xf32> -> vector<32x256xf32>
    %145 = vector.extract_strided_slice %142 {offsets = [0, 0], sizes = [32, 1], strides = [1, 1]} : vector<32x4xf32> to vector<32x1xf32>
    %146 = vector.broadcast %145 : vector<32x1xf32> to vector<32x256xf32>
    %147 = arith.mulf %144, %146 : vector<32x256xf32>
    %148 = vector.extract_strided_slice %142 {offsets = [0, 1], sizes = [32, 1], strides = [1, 1]} : vector<32x4xf32> to vector<32x1xf32>
    %149 = vector.broadcast %148 : vector<32x1xf32> to vector<32x256xf32>
    %150 = arith.addf %147, %149 : vector<32x256xf32>
    %cst_36 = arith.constant 0.000000e+00 : f32
    %151 = vector.broadcast %cst_36 : f32 to vector<32x256xf32>
    %152 = arith.maximumf %150, %151 : vector<32x256xf32>
    %c0_37 = arith.constant 0 : index
    %c0_38 = arith.constant 0 : index
    %153 = vector.load %arg7[%c0_37, %c0_38] : memref<32x8xf32, #tpu.memory_space<vmem>>, vector<32x8xf32>
    %cst_39 = arith.constant dense<0.000000e+00> : vector<32x256xf32>
    %154 = tpu.matmul %153, %141, %cst_39 {dimension_numbers = #tpu.dot_dimension_numbers<[1], [0], [0], [1], [0, 0, 1, 1], [], []>} : vector<32x8xf32>, vector<8x256xf32>, vector<32x256xf32> -> vector<32x256xf32>
    %155 = vector.extract_strided_slice %142 {offsets = [0, 2], sizes = [32, 1], strides = [1, 1]} : vector<32x4xf32> to vector<32x1xf32>
    %156 = vector.broadcast %155 : vector<32x1xf32> to vector<32x256xf32>
    %157 = arith.mulf %154, %156 : vector<32x256xf32>
    %158 = vector.extract_strided_slice %142 {offsets = [0, 3], sizes = [32, 1], strides = [1, 1]} : vector<32x4xf32> to vector<32x1xf32>
    %159 = vector.broadcast %158 : vector<32x1xf32> to vector<32x256xf32>
    %160 = arith.addf %157, %159 : vector<32x256xf32>
    %cst_40 = arith.constant 0.000000e+00 : f32
    %161 = vector.broadcast %cst_40 : f32 to vector<32x256xf32>
    %162 = arith.maximumf %160, %161 : vector<32x256xf32>
    %c0_41 = arith.constant 0 : index
    %c0_42 = arith.constant 0 : index
    %c0_43 = arith.constant 0 : index
    %163 = vector.load %arg11[%c0_41, %c0_42, %c0_43] : memref<1x64x256xf32, #tpu.memory_space<vmem>>, vector<1x32x256xf32>
    %164 = vector.shape_cast %163 : vector<1x32x256xf32> to vector<32x256xf32>
    %165 = vector.shape_cast %152 : vector<32x256xf32> to vector<1x32x256xf32>
    tpu.vector_store %arg11[%c0_41, %c0_42, %c0_43], %165 {strides = array<i32>} : memref<1x64x256xf32, #tpu.memory_space<vmem>>, vector<1x32x256xf32>,
    %c0_44 = arith.constant 0 : index
    %c32 = arith.constant 32 : index
    %c0_45 = arith.constant 0 : index
    %166 = vector.load %arg11[%c0_44, %c32, %c0_45] : memref<1x64x256xf32, #tpu.memory_space<vmem>>, vector<1x32x256xf32>
    %167 = vector.shape_cast %166 : vector<1x32x256xf32> to vector<32x256xf32>
    %168 = vector.shape_cast %162 : vector<32x256xf32> to vector<1x32x256xf32>
    tpu.vector_store %arg11[%c0_44, %c32, %c0_45], %168 {strides = array<i32>} : memref<1x64x256xf32, #tpu.memory_space<vmem>>, vector<1x32x256xf32>,
    return
  }
  func.func @transform_0(%arg0: i32, %arg1: i32) -> (i32, i32, i32) {
    %c0_i32 = arith.constant 0 : i32
    %c0_i32_0 = arith.constant 0 : i32
    return %arg0, %c0_i32, %arg1 : i32, i32, i32
  }
  func.func @transform_1(%arg0: i32, %arg1: i32) -> (i32, i32, i32) {
    %c2_i32 = arith.constant 2 : i32
    %0 = arith.muli %arg1, %c2_i32 : i32
    %c1_i32 = arith.constant 1 : i32
    %1 = arith.subi %0, %c1_i32 : i32
    %c0_i32 = arith.constant 0 : i32
    %2 = arith.maxsi %1, %c0_i32 : i32
    %c0_i32_0 = arith.constant 0 : i32
    %c0_i32_1 = arith.constant 0 : i32
    return %arg0, %c0_i32_0, %2 : i32, i32, i32
  }
  func.func @transform_2(%arg0: i32, %arg1: i32) -> (i32, i32, i32) {
    %c1_i32 = arith.constant 1 : i32
    %0 = arith.addi %arg1, %c1_i32 : i32
    %c2_i32 = arith.constant 2 : i32
    %1 = arith.muli %0, %c2_i32 : i32
    %c1_i32_0 = arith.constant 1 : i32
    %2 = arith.minsi %1, %c1_i32_0 : i32
    %c0_i32 = arith.constant 0 : i32
    %c0_i32_1 = arith.constant 0 : i32
    return %arg0, %c0_i32, %2 : i32, i32, i32
  }
  func.func @transform_3(%arg0: i32, %arg1: i32) -> (i32, i32) {
    %c0_i32 = arith.constant 0 : i32
    %c0_i32_0 = arith.constant 0 : i32
    %c0_i32_1 = arith.constant 0 : i32
    return %c0_i32, %c0_i32_0 : i32, i32
  }
  func.func @transform_4(%arg0: i32, %arg1: i32) -> (i32, i32) {
    %c0_i32 = arith.constant 0 : i32
    %c0_i32_0 = arith.constant 0 : i32
    %c0_i32_1 = arith.constant 0 : i32
    return %c0_i32, %c0_i32_0 : i32, i32
  }
  func.func @transform_5(%arg0: i32, %arg1: i32) -> (i32, i32) {
    %c0_i32 = arith.constant 0 : i32
    %c0_i32_0 = arith.constant 0 : i32
    %c0_i32_1 = arith.constant 0 : i32
    return %c0_i32, %c0_i32_0 : i32, i32
  }
  func.func @transform_6(%arg0: i32, %arg1: i32) -> (i32, i32) {
    %c0_i32 = arith.constant 0 : i32
    %c0_i32_0 = arith.constant 0 : i32
    %c0_i32_1 = arith.constant 0 : i32
    return %c0_i32, %c0_i32_0 : i32, i32
  }
  func.func @transform_7(%arg0: i32, %arg1: i32) -> (i32, i32) {
    %c0_i32 = arith.constant 0 : i32
    %c0_i32_0 = arith.constant 0 : i32
    %c0_i32_1 = arith.constant 0 : i32
    return %c0_i32, %c0_i32_0 : i32, i32
  }
  func.func @transform_8(%arg0: i32, %arg1: i32) -> (i32, i32) {
    %c0_i32 = arith.constant 0 : i32
    %c0_i32_0 = arith.constant 0 : i32
    %c0_i32_1 = arith.constant 0 : i32
    return %c0_i32, %c0_i32_0 : i32, i32
  }
  func.func @transform_9(%arg0: i32, %arg1: i32) -> (i32, i32, i32) {
    %c0_i32 = arith.constant 0 : i32
    %c0_i32_0 = arith.constant 0 : i32
    return %arg0, %c0_i32, %arg1 : i32, i32, i32
  }
}

</mosaic_0001>

<bundles_post_ra>
// kernel: tpu_custom_call.1
= control target key start
LH: loop header
LB: loop body
LE: loop exit
PB: predicated region body
PF: predicated region fallthrough
CT: control target
= control target key end

     0   :  { %14 = vsyncpa [#allocation3], 0  ;;  %s1983_s0 = inlined_call_operand.vmem [shape: f32[2,4,256], index: 0, kind: input, shape index: {}]   ;;  %s1984_s1 = inlined_call_operand.vmem [shape: f32[2,4,256], index: 1, kind: input, shape index: {}]   ;;  %s1985_s2 = inlined_call_operand.vmem [shape: f32[2,4,256], index: 2, kind: input, shape index: {}]   ;;  %s1986_s3 = inlined_call_operand.vmem [shape: f32[8,4], index: 3, kind: input, shape index: {}]   ;;  %s1987_s4 = inlined_call_operand.vmem [shape: f32[32,8], index: 4, kind: input, shape index: {}]   ;;  %s1988_s5 = inlined_call_operand.vmem [shape: f32[32,8], index: 5, kind: input, shape index: {}]   ;;  %s1989_s6 = inlined_call_operand.vmem [shape: f32[8,9], index: 6, kind: input, shape index: {}]   ;;  %s1990_s7 = inlined_call_operand.vmem [shape: f32[8,4], index: 7, kind: input, shape index: {}]   ;;  %s1991_s8 = inlined_call_operand.vmem [shape: f32[32,4], index: 8, kind: input, shape index: {}]   ;;  %s1992_s9 = inlined_call_operand.hbm [shape: f32[2,64,256], index: 9, kind: output, shape index: {}]  }
   0x1   :  { %16 = vsyncpa [#allocation3 + $0x1], 0  ;;  %s1590_s30 = smov 0   ;;  %s1592_s10 = smov 0  }
   0x2   :  { %s1594_s11 = smov 0   ;;  %s1596_s12 = smov 0  }
   0x3   :  { %s1598_s13 = smov 0   ;;  %s1600_s14 = smov 0  }
   0x4 LB: > { %s1294_s15 = sadd.s32 4294967295, %s1519_s14   ;;  %s1295_s16 = sadd.s32 4294967294, %s1519_s14   ;;  %s1519_s14 = sphi %s1600_s14, %s22_s14   ;;  %s1515_s13 = sphi %s1598_s13, %s2009_s13   ;;  %s1511_s12 = sphi %s1596_s12, %s2008_s12   ;;  %s1507_s11 = sphi %s1594_s11, %s2007_s11   ;;  %s1503_s10 = sphi %s1592_s10, %s2006_s10   ;;  %s1499_s30 = sphi %s1590_s30, %s2005_s30  }
   0x5   : > { %s34_s17 = sadd.s32 1, %s1515_s13  ;;  %s269_s18 = sadd.s32 1, %s1507_s11 }
   0x6   : > { %p36_p0 = scmp.ge.s32.totalorder %s34_s17, 2  ;;  %p279_p1 = scmp.ne.s32.totalorder %s1507_s11, %s1503_s10 }
   0x7   : > { %p280_p2 = scmp.eq.s32.totalorder %s1294_s15, 1  ;;  %p285_p3 = scmp.ne.s32.totalorder %s1503_s10, %s1499_s30 }
   0x8   : > { %s2011_s17 = smov (%p36_p0, %s34_s17), 0  ;;  %p286_p5 = scmp.eq.s32.totalorder %s1295_s16, 1 }
   0x9   : > { %p1630_p4 = por %p280_p2, %p279_p1  ;;  %s264_s20 = ssub.s32 %s1515_s13, %s2011_s17 }
   0xa   : > { %p1298_p6 = scmp.ge.s32.totalorder %s1519_s14, 1  ;;  %p267_p7 = scmp.eq.s32.totalorder %s264_s20, 0 }
   0xb   : > { %p1637_p8 = por %p286_p5, %p285_p3  ;;  %p373_p9 = scmp.lt.s32.totalorder %s1519_s14, 3 }
   0xc   : > { %s1643_s22 = scalar_select %p267_p7, %s1507_s11, %s269_s18  }
   0xd   : > { %p374_p10 = pnand %p1298_p6, %p373_p9 }
   0xe   : > { %p438_p11 = scmp.lt.s32.totalorder (!%p374_p10), %s1511_s12, 1  ;;  %s1993_s16 = smov (!%p374_p10), 16  }
   0xf   : > { %377 = sbr.rel (%p374_p10) target bundleno = 648 (0x288), region = 56  ;;  %s1532_s20 = smov (!%p374_p10), 1  }
  0x10   : > { %s1535_s26 = smov (!%p374_p10), 112   ;;  %s1538_s28 = smov (!%p374_p10), 95  }
  0x14   : > { %s439_s23 = scalar_select %p438_p11, %s1511_s12, 1  ;;  %v1522_v5 = vmov 4   ;;  %v658_v6 = vld [vmem:[%s1989_s6] sm:$0xff]  ;;  %v1523_v8 = vmov 7   ;;  %v1524_v9 = vmov 0   ;;  %v1525_v10 = vmov 1  }
  0x15   : > { %1415 = vset.pattern.permute.xlu0 %v1522_v5  ;;  %v1666_v7 = vld [vmem:[%s1990_s7] sm:$0xff]  ;;  %1416 = vset.pattern.permute.xlu1 %v1523_v8  ;;  %vm495_vm0 = vcmask 130048   ;;  %vm511_vm1 = vcmask 1043456   ;;  %vm507_vm2 = vcmask 31744   ;;  %v1526_v17 = vmov 3  }
  0x16   : > { %s1333_s24 = sshll.u32 %s439_s23, 3  ;;  %1413 = vset.pattern.permute.xlu2 %v1524_v9  ;;  %v506_v14 = vld [vmem:[%s1986_s3] sm:$0xff]  ;;  %v1527_v20 = vmov 6   ;;  %v1528_v21 = vmov 8   ;;  %v1529_v22 = vmov 2   ;;  %v1530_v23 = vmov 5  }
  0x17   : > { %s458_s27 = scalar_lea.vmem %s1984_s1, %s1333_s24  ;;  %s445_s15 = scalar_lea.vmem %s1983_s0, %s1333_s24  ;;  %582 = vperm.xlu2 %1413, %v1666_v7   ;;  %v598_v25 = vlaneseq  ;;  %vm669_vm5 = vcmask 7168   ;;  %vm707_vm7 = vcmask 1039360   ;;  %vm728_vm9 = vcmask 924672  }
  0x18   : > { %v480_v0 = vld [vmem:[%s458_s27] sm:$0xf]  ;;  %s1336_s18 = sadd.s32 4, %s1333_s24  ;;  %s1533_s23 = smov 127   ;;  %vm772_vm12 = vcmask 908288   ;;  %vm835_vm13 = vcmask 777216  }
  0x19   : > { %v482_v1 = vld [vmem:[%s445_s15] sm:$0xff]  ;;  %484 = vrot.lane.b32.xlu1 %v480_v0, %s1993_s16  ;;  %s474_s25 = scalar_lea.vmem %s1985_s2, %s1336_s18  ;;  %v1687_v29 = vand.u32 127, %v598_v25  ;;  %s1531_s18 = smov 113   ;;  %vm791_vm14 = vcmask 793600   ;;  %vm759_vm15 = vcmask 916480  }
  0x1a   : > { %488 = vst [vmem:[#allocation1] ss:$2 sm:$0xff] %v482_v1  ;;  %v481_v4 = vld [vmem:[%s474_s25] sm:$0xf]  ;;  %s1534_s25 = smov 111   ;;  %s1536_s27 = smov 97  }
  0x1b   : > { %vm603_vm3 = vcmp.lt.s32.totalorder %v1687_v29, 16  ;;  %v601_v43 = vadd.s32 256, %v1687_v29  ;;  %s1537_s24 = smov 96   ;;  %v600_v62 = vadd.s32 128, %v1687_v29 }
  0x1d   : > { %vm614_vm4 = vcmp.ge.s32.totalorder %v601_v43, 272  ;;  %v641_v63 = vand.u32 15, %v600_v62 }
  0x1f   : > { %1414 = vset.pattern.permute.xlu2 %v1525_v10  ;;  %vm1740_vm6 = vcmp.gt.s32.totalorder %v641_v63, 0  ;;  %vm1750_vm8 = vcmp.lt.s32.totalorder %v641_v63, 15 }
  0x20   : > { %589 = vperm.xlu2 %1414, %v1666_v7  }
  0x21   : > { %v490_v2 = vld.sshfl [vmem:[#allocation1 + $0x8] sm:$0xff pattern:$0x75316420]  ;;  %v489_v3 = vld.sshfl [vmem:[#allocation1] sm:$0xff pattern:$0x75316420] }
  0x22   : > { %493 = vrot.lane.b32.xlu0 %v490_v2, %s1993_s16  ;;  %491 = vrot.lane.b32.xlu1 %v489_v3, %s1993_s16 }
  0x28   : > { %1417 = vset.pattern.permute.xlu2 %v1524_v9 }
  0x29   : > { %682 = vperm.xlu2 %1417, %v658_v6  }
  0x2a   : > { %500 = vrot.lane.b32.xlu0 %v481_v4, %s1993_s16  ;;  %807 = vperm.xlu1 %1416, %v658_v6  }
  0x31   : > { %1420 = vset.pattern.permute.xlu2 %v1526_v17 }
  0x32   : > { %744 = vperm.xlu0 %1415, %v658_v6   ;;  %736 = vperm.xlu2 %1420, %v658_v6  }
  0x33   : > { %1419 = vset.pattern.permute.xlu1 %v1529_v22 }
  0x34   : > { %715 = vperm.xlu1 %1419, %v658_v6  }
  0x3a   : > { %1418 = vset.pattern.permute.xlu0 %v1525_v10  ;;  %1422 = vset.pattern.permute.xlu2 %v1527_v20 }
  0x3b   : > { %690 = vperm.xlu0 %1418, %v658_v6   ;;  %799 = vperm.xlu2 %1422, %v658_v6  }
  0x43   : > { %1423 = vset.pattern.permute.xlu2 %v1528_v21  ;;  %1421 = vset.pattern.permute.xlu0 %v1530_v23 }
  0x44   : > { %845 = vperm.xlu2 %1423, %v658_v6   ;;  %780 = vperm.xlu0 %1421, %v658_v6  }
  0x4c   : > { %1431 = vset.pattern.permute.xlu2 %v1524_v9  ;;  %1424 = vset.pattern.permute.xlu0 %v1526_v17 }
  0x71   : > { %v583_v24 = vpop.permute.xlu2 %582 }
  0x7a   : > { %v590_v26 = vpop.permute.xlu2 %589 }
  0x83   : > { %v1718_v50 = vpop.permute.xlu2 %682 }
  0x8b   : > { %v485_v11 = vpop.permute.xlu1 %484 }
  0x8c   : > { %v1722_v52 = vpop.permute.xlu2 %736 }
  0x94   : > { %v494_v12 = vpop.permute.xlu0 %493  ;;  %v492_v13 = vpop.permute.xlu1 %491 }
  0x95   : > { %v503_v15 = vsel %vm495_vm0, %v485_v11, %v492_v13  ;;  %v496_v16 = vsel %vm495_vm0, %v492_v13, %v494_v12  ;;  %v1726_v54 = vpop.permute.xlu2 %799 }
  0x96   : > { %1306 = vmatpush.msk.msra.mxu0 %vm511_vm1, %v503_v15  ;;  %1308 = vmatpush.msk.msra.mxu1 %vm511_vm1, %v496_v16 }
  0x97   : > { %1307 = vmatmul.msk.f32.vlgmr.msra.gmra.mxu0 %vm507_vm2, %v506_v14  ;;  %1309 = vmatmul.msk.f32.vlgmr.msra.gmra.mxu1 %vm507_vm2, %v506_v14 }
  0x9c   : > { %v501_v18 = vpop.permute.xlu0 %500  ;;  %v808_v44 = vpop.permute.xlu1 %807 }
  0x9d   : > { %v504_v19 = vsel %vm495_vm0, %v494_v12, %v501_v18  ;;  %vm822_vm0 = vcmask 785408  }
  0x9e   : > { %1310 = vmatpush.msk.msra.mxu2 %vm511_vm1, %v504_v19  ;;  %v1730_v55 = vpop.permute.xlu2 %845  ;;  %vm884_vm1 = vcmask 64512  }
  0x9f   : > { %1311 = vmatmul.msk.f32.vlgmr.msra.gmra.mxu2 %vm507_vm2, %v506_v14 }
  0xa4   : > { %v745_v40 = vpop.permute.xlu0 %744 }
  0xa6   : > { %v1733_v59 = vpop.permute.xlu1 %715 }
  0xad   : > { %v691_v57 = vpop.permute.xlu0 %690 }
  0xb6   : > { %v1735_v60 = vpop.permute.xlu0 %780 }
 0x114   : > { %v537_v27 = vpop.f32.mrf.mxu0  ;;  %v557_v28 = vpop.f32.mrf.mxu1 }
 0x115   : > { %v585_v30 = vmul.f32 %v583_v24, %v537_v27  ;;  %v586_v31 = vmul.f32 %v583_v24, %v557_v28 }
 0x117   : > { %v592_v32 = vadd.f32 %v590_v26, %v585_v30  ;;  %v593_v33 = vadd.f32 %v590_v26, %v586_v31  ;;  %v1768_v30 = vld [vmem:[%s1991_s8] sm:$0xff] }
 0x119   : > { %v595_v34 = vmax.f32 %v592_v32, 0.0  ;;  %v1690_v35 = vmax.f32 %v593_v33, 0.0  ;;  %v1774_v32 = vld [vmem:[%s1991_s8 + $0x18] sm:$0xff] }
 0x11b   : > { %v1692_v36 = vsel %vm603_vm3, 0.0, %v595_v34  ;;  %724 = vrot.lane.b32.xlu2 %v1690_v35, %s1531_s18  ;;  %667 = vrot.lane.b32.xlu1 %v1690_v35, %s1532_s20  ;;  %v748_v41 = vmul.f32 %v745_v40, %v1690_v35  ;;  %v811_v46 = vmul.f32 %v808_v44, %v1690_v35  ;;  %v694_v11 = vmul.f32 %v691_v57, %v1690_v35 }
 0x11c   : > { %701 = vrot.lane.b32.xlu0 %v1692_v36, %s1533_s23  ;;  %v1425_v37 = vpack.i.bf16 %v1690_v35, %v1692_v36  ;;  %v747_v49 = vmul.f32 %v745_v40, %v1692_v36  ;;  %v810_v51 = vmul.f32 %v808_v44, %v1692_v36 }
 0x122   : > { %v577_v38 = vpop.f32.mrf.mxu2 }
 0x123   : > { %665 = vrot.lane.b32.xlu2 %v1692_v36, %s1532_s20  ;;  %703 = vrot.lane.b32.xlu1 %v1690_v35, %s1533_s23  ;;  %v587_v39 = vmul.f32 %v583_v24, %v577_v38  ;;  %v1787_v38 = vld [vmem:[%s1991_s8 + $0x10] sm:$0xff] }
 0x124   : > { %766 = vrot.lane.b32.xlu0 %v1692_v36, %s1534_s25 }
 0x125   : > { %v594_v42 = vadd.f32 %v590_v26, %v587_v39 }
 0x127   : > { %v597_v45 = vmax.f32 %v594_v42, 0.0 }
 0x129   : > { %v629_v47 = vsel %vm614_vm4, 0.0, %v597_v45 }
 0x12a   : > { %v812_v48 = vmul.f32 %v808_v44, %v629_v47  ;;  %v749_v53 = vmul.f32 %v745_v40, %v629_v47 }
 0x12b   : > { %722 = vrot.lane.b32.xlu2 %v1692_v36, %s1531_s18  ;;  %768 = vrot.lane.b32.xlu1 %v1690_v35, %s1534_s25 }
 0x12c   : > { %755 = vrot.lane.b32.xlu0 %v748_v41, %s1535_s26 }
 0x133   : > { %789 = vrot.lane.b32.xlu1 %v1690_v35, %s1536_s27  ;;  %818 = vrot.lane.b32.xlu2 %v811_v46, %s1537_s24 }
 0x134   : > { %726 = vrot.lane.b32.xlu0 %v629_v47, %s1531_s18 }
 0x13b   : > { %831 = vrot.lane.b32.xlu1 %v1690_v35, %s1538_s28  ;;  %705 = vrot.lane.b32.xlu2 %v629_v47, %s1533_s23  ;;  %v634_v35 = vand.u32 15, %v1687_v29  ;;  %s434_s23 = sand.u32 1, %s1503_s10  }
 0x13c   : > { %829 = vrot.lane.b32.xlu0 %v1692_v36, %s1538_s28  ;;  %s1162_s18 = scalar_lea.sflag [#allocation3], %s434_s23 }
 0x13d   : > { %vm1789_vm10 = vcmp.lt.s32.totalorder %v634_v35, 15  ;;  %vm1797_vm11 = vcmp.gt.s32.totalorder %v634_v35, 0 }
 0x143   : > { %787 = vrot.lane.b32.xlu1 %v1692_v36, %s1536_s27  ;;  %770 = vrot.lane.b32.xlu2 %v629_v47, %s1534_s25  ;;  %s1299_s25 = sshll.u32 %s434_s23, 7 }
 0x144   : > { %820 = vrot.lane.b32.xlu0 %v812_v48, %s1537_s24 }
 0x14b   : > { %753 = vrot.lane.b32.xlu1 %v747_v49, %s1535_s26  ;;  %833 = vrot.lane.b32.xlu2 %v629_v47, %s1538_s28  ;;  %s1461_s28 = scalar_lea.hbm %s1992_s9, 256 }
 0x14c   : > { %859 = vperm.xlu0 %1424, %v1666_v7  }
 0x153   : > { %660 = vrot.lane.b32.xlu1 %v629_v47, %s1536_s27  ;;  %816 = vrot.lane.b32.xlu2 %v810_v51, %s1537_s24  ;;  %s1337_s27 = sshll.u32 %s1511_s12, 7 }
 0x154   : > { %1432 = vset.pattern.permute.xlu0 %v1524_v9  ;;  %s1175_s29 = scalar_lea.hbm %s1992_s9, %s1337_s27 }
 0x155   : > { %967 = vperm.xlu0 %1432, %v1787_v38   ;;  %s1178_s15 = sshll.u32 %s1175_s29, 4  ;;  %s1179_s15 = int_to_ptr.hbm [resolvable:$true] %s1178_s15 }
 0x156   : > { %s1455_s20 = sshra.s32 %s1179_s15, 4  ;;  %s1456_s20 = int_to_ptr.hbm [resolvable:$true] %s1455_s20 }
 0x157   : > { %p1462_p1 = scmp.lt.s32.totalorder %s1456_s20, %s1992_s9 }
 0x15b   : > { %757 = vrot.lane.b32.xlu1 %v749_v53, %s1535_s26  ;;  %878 = vrot.lane.b32.xlu2 %v629_v47, %s1535_s26  ;;  %v693_v47 = vmul.f32 %v691_v57, %v1692_v36 }
 0x15d   : > { %1435 = vset.pattern.permute.xlu0 %v1525_v10 }
 0x15e   : > { %996 = vperm.xlu0 %1435, %v1774_v32  }
 0x163   : > { %853 = vperm.xlu1 %1419, %v1666_v7  }
 0x166   : > { %1438 = vset.pattern.permute.xlu0 %v1526_v17 }
 0x167   : > { %1114 = vperm.xlu0 %1438, %v1768_v30  }
 0x16b   : > { %1426 = vrot.lane.b32.xlu1 %v1425_v37, %s1535_s26  ;;  %v1782_v37 = vld [vmem:[%s1991_s8 + $0x8] sm:$0xff]  ;;  %s1915_s26 = scalar_lea.vmem [#allocation2], %s1299_s25  ;;  %s1457_s25 = scalar_lea.hbm %s1456_s20, 128 }
 0x16c   : > { %1430 = vset.pattern.permute.xlu1 %v1524_v9  ;;  %962 = vperm.xlu2 %1431, %v1782_v37   ;;  %s1176_s12 = sshll.u32 %s1915_s26, 4  ;;  %p1458_p12 = scmp.ne.s32.totalorder %s1456_s20, %s1457_s25  ;;  %s1177_s12 = int_to_ptr.vmem [resolvable:$true] %s1176_s12 }
 0x16d   : > { %p1463_p2 = scmp.lt.s32.totalorder %s1461_s28, %s1457_s25 }
 0x16e   : > { %p1459_p13 = pnand %p1458_p12, %p1630_p4 }
 0x16f   : > { %p1464_p3 = por %p1463_p2, %p1462_p1 }
 0x170   : > { %p1460_p0 = pneg %p1459_p13 }
 0x172   : > { %p1465_p5 = pnand %p1464_p3, %p1460_p0 }
 0x173   : > { %957 = vperm.xlu1 %1430, %v1768_v30  }
 0x174   : > { %1433 = vset.pattern.permute.xlu2 %v1525_v10 }
 0x175   : > { %v725_v56 = vpop.permute.xlu2 %724  ;;  %984 = vperm.xlu2 %1433, %v1768_v30  }
 0x17b   : > { %972 = vperm.xlu1 %1430, %v1774_v32  }
 0x17d   : > { %v666_v58 = vpop.permute.xlu2 %665  ;;  %992 = vperm.xlu2 %1433, %v1787_v38  }
 0x183   : > { %1434 = vset.pattern.permute.xlu1 %v1525_v10 }
 0x184   : > { %988 = vperm.xlu1 %1434, %v1782_v37  }
 0x185   : > { %v723_v61 = vpop.permute.xlu2 %722  ;;  %1437 = vset.pattern.permute.xlu2 %v1529_v22 }
 0x186   : > { %v729_v41 = vsel %vm728_vm9, %v723_v61, %v725_v56  ;;  %1094 = vperm.xlu2 %1437, %v1782_v37  }
 0x187   : > { %v733_v48 = vsel %vm1797_vm11, %v729_v41, 0.0 }
 0x188   : > { %v739_v62 = vmul.f32 %v1722_v52, %v733_v48 }
 0x18c   : > { %1436 = vset.pattern.permute.xlu1 %v1529_v22  ;;  %v1016_v22 = vld [vmem:[%s1988_s5 + $0x8] sm:$0xff] }
 0x18d   : > { %v1738_v0 = vpop.permute.xlu2 %818  ;;  %v668_v1 = vpop.permute.xlu1 %667  ;;  %1090 = vperm.xlu1 %1436, %v1768_v30  }
 0x18e   : > { %v670_v3 = vsel %vm669_vm5, %v666_v58, %v668_v1  ;;  %v1745_v4 = vpop.permute.xlu0 %701  ;;  %1102 = vperm.xlu2 %1437, %v1774_v32  }
 0x18f   : > { %v679_v5 = vsel %vm1740_vm6, %v670_v3, 0.0 }
 0x190   : > { %v686_v6 = vmul.f32 %v1718_v50, %v679_v5 }
 0x192   : > { %v696_v15 = vadd.f32 %v694_v11, %v686_v6 }
 0x195   : > { %v706_v8 = vpop.permute.xlu2 %705  ;;  %v704_v9 = vpop.permute.xlu1 %703  ;;  %1098 = vperm.xlu1 %1436, %v1787_v38  }
 0x196   : > { %v709_v12 = vsel %vm707_vm7, %v704_v9, %v706_v8  ;;  %v767_v13 = vpop.permute.xlu0 %766  ;;  %v708_v40 = vsel %vm707_vm7, %v1745_v4, %v704_v9  ;;  %1440 = vset.pattern.permute.xlu2 %v1526_v17 }
 0x197   : > { %v713_v14 = vsel %vm1750_vm8, %v709_v12, 0.0  ;;  %v712_v45 = vsel %vm1789_vm10, %v708_v40, 0.0  ;;  %1122 = vperm.xlu2 %1440, %v1787_v38  }
 0x198   : > { %v719_v16 = vmul.f32 %v1733_v59, %v713_v14 }
 0x19a   : > { %v721_v18 = vadd.f32 %v719_v16, %v696_v15 }
 0x19d   : > { %v769_v19 = vpop.permute.xlu1 %768  ;;  %v771_v34 = vpop.permute.xlu2 %770  ;;  %1439 = vset.pattern.permute.xlu1 %v1526_v17 }
 0x19e   : > { %v1759_v20 = vpop.permute.xlu0 %755  ;;  %v774_v49 = vsel %vm772_vm12, %v769_v19, %v771_v34  ;;  %1118 = vperm.xlu1 %1439, %v1782_v37   ;;  %v1017_v37 = vld [vmem:[%s1988_s5 + $0x10] sm:$0xff] }
 0x19f   : > { %v778_v63 = vsel %vm1750_vm8, %v774_v49, 0.0  ;;  %v871_v49 = vld [vmem:[%s1987_s4 + $0x8] sm:$0xff] }
 0x1a5   : > { %v790_v21 = vpop.permute.xlu1 %789  ;;  %v834_v51 = vpop.permute.xlu2 %833 }
 0x1a6   : > { %v727_v23 = vpop.permute.xlu0 %726  ;;  %1126 = vperm.xlu1 %1439, %v1774_v32   ;;  %v1018_v32 = vld [vmem:[%s1988_s5 + $0x18] sm:$0xff] }
 0x1a7   : > { %v730_v24 = vsel %vm728_vm9, %v725_v56, %v727_v23  ;;  %v718_v56 = vmul.f32 %v1733_v59, %v712_v45 }
 0x1a8   : > { %v734_v25 = vsel %vm1740_vm6, %v730_v24, 0.0 }
 0x1a9   : > { %v740_v26 = vmul.f32 %v1722_v52, %v734_v25  ;;  %v784_v52 = vmul.f32 %v1735_v60, %v778_v63 }
 0x1ab   : > { %v742_v27 = vadd.f32 %v740_v26, %v721_v18 }
 0x1ad   : > { %v832_v28 = vpop.permute.xlu1 %831 }
 0x1ae   : > { %v830_v43 = vpop.permute.xlu0 %829  ;;  %v837_v36 = vsel %vm835_vm13, %v832_v28, %v834_v51  ;;  %v872_v51 = vld [vmem:[%s1987_s4 + $0x10] sm:$0xff] }
 0x1af   : > { %v841_v9 = vsel %vm707_vm7, %v837_v36, %v1745_v4  ;;  %v836_v14 = vsel %vm835_vm13, %v830_v43, %v832_v28  ;;  %v817_v4 = vpop.permute.xlu2 %816  ;;  %v1015_v43 = vld [vmem:[%s1988_s5] sm:$0xff] }
 0x1b0   : > { %v842_v23 = vsel %vm1789_vm10, %v836_v14, 0.0  ;;  %v823_v26 = vsel %vm822_vm0, %v817_v4, %v1738_v0 }
 0x1b5   : > { %v788_v31 = vpop.permute.xlu1 %787 }
 0x1b6   : > { %v792_v57 = vsel %vm791_vm14, %v788_v31, %v790_v21  ;;  %v821_v15 = vpop.permute.xlu0 %820 }
 0x1b7   : > { %v796_v11 = vsel %vm1797_vm11, %v792_v57, 0.0  ;;  %v879_v45 = vpop.permute.xlu2 %878 }
 0x1bd   : > { %v754_v33 = vpop.permute.xlu1 %753 }
 0x1be   : > { %v760_v12 = vsel %vm759_vm15, %v754_v33, %v1759_v20  ;;  %v860_v35 = vpop.permute.xlu0 %859 }
 0x1c5   : > { %v661_v42 = vpop.permute.xlu1 %660 }
 0x1c6   : > { %v673_v44 = vsel %vm669_vm5, %v661_v42, %v666_v58  ;;  %v773_v58 = vsel %vm772_vm12, %v767_v13, %v769_v19  ;;  %v793_v1 = vsel %vm791_vm14, %v790_v21, %v661_v42  ;;  %v843_v19 = vsel %vm1750_vm8, %v841_v9, 0.0  ;;  %v963_v38 = vpop.permute.xlu2 %962 }
 0x1c7   : > { %v678_v46 = vsel %vm1797_vm11, %v673_v44, 0.0  ;;  %v797_v6 = vsel %vm1740_vm6, %v793_v1, 0.0  ;;  %v802_v21 = vmul.f32 %v1726_v54, %v796_v11  ;;  %v849_v28 = vmul.f32 %v1730_v55, %v843_v19 }
 0x1c8   : > { %v685_v53 = vmul.f32 %v1718_v50, %v678_v46  ;;  %v777_v50 = vsel %vm1789_vm10, %v773_v58, 0.0  ;;  %v803_v10 = vmul.f32 %v1726_v54, %v797_v6  ;;  %v848_v54 = vmul.f32 %v1730_v55, %v842_v23  ;;  %v870_v46 = vld [vmem:[%s1987_s4] sm:$0xff] }
 0x1c9   : > { %v783_v2 = vmul.f32 %v1735_v60, %v777_v50  ;;  %v824_v60 = vsel %vm822_vm0, %v1738_v0, %v821_v15 }
 0x1ca   : > { %v695_v61 = vadd.f32 %v693_v47, %v685_v53  ;;  %v873_v53 = vld [vmem:[%s1987_s4 + $0x18] sm:$0xff] }
 0x1cc   : > { %v720_v3 = vadd.f32 %v718_v56, %v695_v61 }
 0x1cd   : > { %v758_v59 = vpop.permute.xlu1 %757 }
 0x1ce   : > { %v741_v5 = vadd.f32 %v739_v62, %v720_v3  ;;  %v761_v8 = vsel %vm759_vm15, %v1759_v20, %v758_v59  ;;  %v1904_v62 = vpop.permute.xlu0 %967 }
 0x1cf   : > { %v765_v13 = vadd.f32 %v761_v8, %v742_v27  ;;  %v985_v58 = vpop.permute.xlu2 %984 }
 0x1d0   : > { %v764_v16 = vadd.f32 %v760_v12, %v741_v5 }
 0x1d1   : > { %v786_v18 = vadd.f32 %v784_v52, %v765_v13 }
 0x1d2   : > { %v785_v20 = vadd.f32 %v783_v2, %v764_v16 }
 0x1d3   : > { %v805_v24 = vadd.f32 %v803_v10, %v786_v18 }
 0x1d4   : > { %v804_v25 = vadd.f32 %v802_v21, %v785_v20 }
 0x1d5   : > { %v828_v27 = vadd.f32 %v824_v60, %v805_v24  ;;  %v854_v31 = vpop.permute.xlu1 %853 }
 0x1d6   : > { %v827_v7 = vadd.f32 %v823_v26, %v804_v25  ;;  %v1908_v36 = vpop.permute.xlu0 %996 }
 0x1d7   : > { %v851_v33 = vadd.f32 %v849_v28, %v828_v27  ;;  %v1906_v63 = vpop.permute.xlu2 %992 }
 0x1d8   : > { %v850_v34 = vadd.f32 %v848_v54, %v827_v7 }
 0x1d9   : > { %v857_v39 = vmul.f32 %v854_v31, %v851_v33 }
 0x1da   : > { %v856_v0 = vmul.f32 %v854_v31, %v850_v34 }
 0x1db   : > { %v863_v40 = vadd.f32 %v860_v35, %v857_v39 }
 0x1dc   : > { %v862_v29 = vadd.f32 %v860_v35, %v856_v0 }
 0x1dd   : > { %v1427_v41 = vpop.permute.xlu1 %1426  ;;  %v865_v42 = vmax.f32 %v863_v40, 0.0 }
 0x1de   : > { %v1429_v55 = vunpack.i.h.bf16 %v1427_v41  ;;  %v1428_v30 = vunpack.i.l.bf16 %v1427_v41  ;;  %v864_v44 = vmax.f32 %v862_v29, 0.0  ;;  %v1115_v59 = vpop.permute.xlu0 %1114 }
 0x1df   : > { %1075 = vmatpush.msrb.mxu2 %v865_v42 }
 0x1e0   : > { %1046 = vmatpush.msrb.mxu1 %v864_v44  ;;  %1324 = vmatmul.msk.f32.vlgmr.msrb.gmra.mxu2 %vm884_vm1, %v1015_v43  ;;  %v880_v47 = vsel %vm759_vm15, %v1428_v30, %v1429_v55  ;;  %v881_v48 = vsel %vm759_vm15, %v1429_v55, %v879_v45  ;;  %v1095_v57 = vpop.permute.xlu2 %1094 }
 0x1e1   : > { %912 = vmatpush.msra.mxu3 %v880_v47  ;;  %941 = vmatpush.msrb.mxu0 %v881_v48 }
 0x1e2   : > { %1320 = vmatmul.msk.f32.vlgmr.msrb.gmra.mxu1 %vm884_vm1, %v1015_v43  ;;  %1312 = vmatmul.msk.f32.vlgmr.msra.gmra.mxu3 %vm884_vm1, %v870_v46 }
 0x1e3   : > { %1316 = vmatmul.msk.f32.vlgmr.msrb.gmra.mxu0 %vm884_vm1, %v870_v46 }
 0x1e5   : > { %v958_v17 = vpop.permute.xlu1 %957 }
 0x1e8   : > { %1325 = vmatmul.msk.f32.gmra.mxu2 %vm884_vm1, %v1016_v22  ;;  %v1913_v15 = vpop.permute.xlu2 %1102 }
 0x1ea   : > { %1321 = vmatmul.msk.f32.gmra.mxu1 %vm884_vm1, %v1016_v22  ;;  %1313 = vmatmul.msk.f32.gmra.mxu3 %vm884_vm1, %v871_v49 }
 0x1eb   : > { %1317 = vmatmul.msk.f32.gmra.mxu0 %vm884_vm1, %v871_v49 }
 0x1ed   : > { %v1902_v56 = vpop.permute.xlu1 %972 }
 0x1f0   : > { %1326 = vmatmul.msk.f32.gmra.mxu2 %vm884_vm1, %v1017_v37 }
 0x1f1   : > { %v1123_v39 = vpop.permute.xlu2 %1122 }
 0x1f2   : > { %1322 = vmatmul.msk.f32.gmra.mxu1 %vm884_vm1, %v1017_v37  ;;  %1314 = vmatmul.msk.f32.gmra.mxu3 %vm884_vm1, %v872_v51 }
 0x1f3   : > { %1318 = vmatmul.msk.f32.gmra.mxu0 %vm884_vm1, %v872_v51 }
 0x1f6   : > { %v989_v61 = vpop.permute.xlu1 %988 }
 0x1f8   : > { %1327 = vmatmul.msk.f32.gmra.mxu2 %vm884_vm1, %v1018_v32 }
 0x1fa   : > { %1323 = vmatmul.msk.f32.gmra.mxu1 %vm884_vm1, %v1018_v32  ;;  %1315 = vmatmul.msk.f32.gmra.mxu3 %vm884_vm1, %v873_v53 }
 0x1fb   : > { %1319 = vmatmul.msk.f32.gmra.mxu0 %vm884_vm1, %v873_v53 }
 0x1ff   : > { %v1091_v1 = vpop.permute.xlu1 %1090 }
 0x207   : > { %v1099_v3 = vpop.permute.xlu1 %1098 }
 0x210   : > { %v1119_v4 = vpop.permute.xlu1 %1118 }
 0x218   : > { %v1127_v51 = vpop.permute.xlu1 %1126 }
 0x25f   : > { %v1048_v50 = vpop.f32.mrf.mxu1 }
 0x260   : > { %v943_v52 = vpop.f32.mrf.mxu0  ;;  %v1105_v5 = vmul.f32 %v1091_v1, %v1048_v50 }
 0x261   : > { %v976_v6 = vmul.f32 %v958_v17, %v943_v52 }
 0x262   : > { %v1129_v8 = vadd.f32 %v1115_v59, %v1105_v5 }
 0x263   : > { %v1000_v9 = vadd.f32 %v985_v58, %v976_v6  ;;  %v1077_v11 = vpop.f32.mrf.mxu2 }
 0x264   : > { %v1106_v12 = vmul.f32 %v1091_v1, %v1077_v11  ;;  %v1137_v13 = vmax.f32 %v1129_v8, 0.0 }
 0x265   : > { %v1008_v2 = vmax.f32 %v1000_v9, 0.0  ;;  %v914_v14 = vpop.f32.mrf.mxu3 }
 0x266   : > { %v975_v16 = vmul.f32 %v958_v17, %v914_v14  ;;  %v1130_v10 = vadd.f32 %v1115_v59, %v1106_v12  ;;  %1153 = vst [vmem:[%s1915_s26 + $0x40] sm:$0xff] %v1137_v13 }
 0x267   : > { %1146 = vst [vmem:[%s1915_s26 + $0x8] sm:$0xff] %v1008_v2  ;;  %v1051_v18 = vpop.f32.mrf.mxu1 }
 0x268   : > { %v999_v19 = vadd.f32 %v985_v58, %v975_v16  ;;  %v1107_v21 = vmul.f32 %v1095_v57, %v1051_v18  ;;  %v946_v20 = vpop.f32.mrf.mxu0  ;;  %v1138_v23 = vmax.f32 %v1130_v10, 0.0 }
 0x269   : > { %v978_v24 = vmul.f32 %v963_v38, %v946_v20 }
 0x26a   : > { %v1007_v60 = vmax.f32 %v999_v19, 0.0  ;;  %1154 = vst [vmem:[%s1915_s26 + $0x48] sm:$0xff] %v1138_v23  ;;  %v1131_v25 = vadd.f32 %v1119_v4, %v1107_v21 }
 0x26b   : > { %v1002_v26 = vadd.f32 %v989_v61, %v978_v24  ;;  %v1080_v27 = vpop.f32.mrf.mxu2 }
 0x26c   : > { %1145 = vst [vmem:[%s1915_s26] sm:$0xff] %v1007_v60  ;;  %v1108_v28 = vmul.f32 %v1095_v57, %v1080_v27  ;;  %v1139_v31 = vmax.f32 %v1131_v25, 0.0 }
 0x26d   : > { %v1010_v54 = vmax.f32 %v1002_v26, 0.0  ;;  %v917_v7 = vpop.f32.mrf.mxu3 }
 0x26e   : > { %v977_v33 = vmul.f32 %v963_v38, %v917_v7  ;;  %v1132_v34 = vadd.f32 %v1119_v4, %v1108_v28  ;;  %1155 = vst [vmem:[%s1915_s26 + $0x50] sm:$0xff] %v1139_v31 }
 0x26f   : > { %1148 = vst [vmem:[%s1915_s26 + $0x18] sm:$0xff] %v1010_v54  ;;  %v1054_v35 = vpop.f32.mrf.mxu1 }
 0x270   : > { %v1001_v0 = vadd.f32 %v989_v61, %v977_v33  ;;  %v1109_v40 = vmul.f32 %v1099_v3, %v1054_v35  ;;  %v949_v29 = vpop.f32.mrf.mxu0  ;;  %v1140_v41 = vmax.f32 %v1132_v34, 0.0 }
 0x271   : > { %v980_v42 = vmul.f32 %v1904_v62, %v949_v29 }
 0x272   : > { %v1009_v43 = vmax.f32 %v1001_v0, 0.0  ;;  %v1133_v55 = vadd.f32 %v1123_v39, %v1109_v40  ;;  %1156 = vst [vmem:[%s1915_s26 + $0x58] sm:$0xff] %v1140_v41 }
 0x273   : > { %v1004_v30 = vadd.f32 %v1906_v63, %v980_v42  ;;  %v1083_v44 = vpop.f32.mrf.mxu2 }
 0x274   : > { %1147 = vst [vmem:[%s1915_s26 + $0x10] sm:$0xff] %v1009_v43  ;;  %v1141_v45 = vmax.f32 %v1133_v55, 0.0  ;;  %v1110_v46 = vmul.f32 %v1099_v3, %v1083_v44 }
 0x275   : > { %v1012_v47 = vmax.f32 %v1004_v30, 0.0  ;;  %v920_v48 = vpop.f32.mrf.mxu3 }
 0x276   : > { %1157 = vst [vmem:[%s1915_s26 + $0x60] sm:$0xff] %v1141_v45  ;;  %v1134_v22 = vadd.f32 %v1123_v39, %v1110_v46  ;;  %v979_v49 = vmul.f32 %v1904_v62, %v920_v48 }
 0x277   : > { %1150 = vst [vmem:[%s1915_s26 + $0x28] sm:$0xff] %v1012_v47  ;;  %v1057_v37 = vpop.f32.mrf.mxu1 }
 0x278   : > { %v1142_v32 = vmax.f32 %v1134_v22, 0.0  ;;  %v1003_v53 = vadd.f32 %v1906_v63, %v979_v49  ;;  %v1111_v17 = vmul.f32 %v1913_v15, %v1057_v37  ;;  %v952_v38 = vpop.f32.mrf.mxu0 }
 0x279   : > { %v982_v58 = vmul.f32 %v1902_v56, %v952_v38 }
 0x27a   : > { %1158 = vst [vmem:[%s1915_s26 + $0x68] sm:$0xff] %v1142_v32  ;;  %v1011_v61 = vmax.f32 %v1003_v53, 0.0  ;;  %v1135_v1 = vadd.f32 %v1127_v51, %v1111_v17 }
 0x27b   : > { %v1006_v62 = vadd.f32 %v1908_v36, %v982_v58  ;;  %v1086_v57 = vpop.f32.mrf.mxu2 }
 0x27c   : > { %1149 = vst [vmem:[%s1915_s26 + $0x20] sm:$0xff] %v1011_v61  ;;  %v1143_v3 = vmax.f32 %v1135_v1, 0.0  ;;  %v1112_v63 = vmul.f32 %v1913_v15, %v1086_v57 }
 0x27d   : > { %v1014_v50 = vmax.f32 %v1006_v62, 0.0  ;;  %v923_v59 = vpop.f32.mrf.mxu3 }
 0x27e   : > { %1159 = vst [vmem:[%s1915_s26 + $0x70] sm:$0xff] %v1143_v3  ;;  %v1136_v52 = vadd.f32 %v1127_v51, %v1112_v63  ;;  %v981_v5 = vmul.f32 %v1902_v56, %v923_v59 }
 0x27f   : > { %1152 = vst [vmem:[%s1915_s26 + $0x38] sm:$0xff] %v1014_v50 }
 0x280   : > { %v1144_v6 = vmax.f32 %v1136_v52, 0.0  ;;  %v1005_v8 = vadd.f32 %v1908_v36, %v981_v5 }
 0x282   : > { %1160 = vst [vmem:[%s1915_s26 + $0x78] sm:$0xff] %v1144_v6  ;;  %v1013_v9 = vmax.f32 %v1005_v8, 0.0 }
 0x284   : > { %1151 = vst [vmem:[%s1915_s26 + $0x30] sm:$0xff] %v1013_v9 }
 0x285   : > { %1468 = shalt.err (!%p1465_p5)
}
 0x286   : > { %s1539_s23 = smov 256   ;;  %s2004_s26 = smov 16  }
 0x287   : > { %1339 = dma.vmem_to_hbm [thread:$0]  (%p1630_p4), %s1177_s12, 2048, %s1179_s15, %s1162_s18, %s1539_s23, %s1539_s23, %s2004_s26  }
 0x288 PF: > { %p1345_p6 = scmp.ge.s32.totalorder %s1519_s14, 2  ;;  %s1193_s27 = sand.u32 1, %s1499_s30  }
 0x289   : > { %s1194_s16 = scalar_lea.sflag [#allocation3], %s1193_s27 }
 0x28a   : > { %p1342_p7 = pnand %p1345_p6, %p1637_p8 }
 0x28c   : > { %p1343_p9 = pneg %p1342_p7 }
 0x28e   : > { %1494 = dma.done.wait (%p1343_p9), %s1194_s16, 2048  }
 0x28f   : > { %1496 = vsyncadd (%p1343_p9), %s1194_s16, 4294965248  ;;  %s22_s14 = sadd.s32 1, %s1519_s14   ;;  %s2005_s30 = smov %s1503_s10 }
 0x290   : > { %p19_p10 = scmp.ge.s32.totalorder %s22_s14, 4   ;;  %s2006_s10 = smov %s1507_s11 }
 0x291   : > { %s2007_s11 = smov %s1643_s22  ;;  %s2008_s12 = smov %s1515_s13 }
 0x292   : > { %s2009_s13 = smov %s2011_s17  ;;  %21 = sbr.rel (!%p19_p10) target bundleno = 4 (0x4), region = 97 }
 0x297   :  { %1200 = vsyncpa [#allocation3], 1 }
 0x298   :  { %1202 = vsyncpa [#allocation3 + $0x1], 1 }

</bundles_post_ra>
